<compile_context>
chip_gen: v6e
topology: v6e:2x2x1
jax: 0.10.0
libtpu: 0.0.40
codegen_flags: <defaults>
</compile_context>

<pallas_src>
import functools

import jax
import jax.numpy as jnp
from jax.experimental import pallas as pl
from jax.experimental.pallas import tpu as pltpu

MLP_HIDDEN_LAYER_NEURONS = 8
LEAKY_SLOPE = 0.01  # torch.nn.LeakyReLU default negative_slope


def _leaky_relu(x):
    return jnp.where(x > 0, x, LEAKY_SLOPE * x)


def _mlp_kernel(x_ref, w1_ref, b1_ref, w2_ref, b2_ref, w3_ref, b3_ref, o_ref):
    # Fused three-layer MLP on one batch tile, batch on the lane axis.
    # Matmuls hit the MXU with f32 accumulation; LeakyReLU stays on the VPU
    # with fully dense lanes.
    x = x_ref[...]                                             # (num_in, Bt)

    h1 = jnp.dot(w1_ref[...], x, preferred_element_type=jnp.float32) + b1_ref[...]
    h1 = _leaky_relu(h1)                                       # (H, Bt)

    h2 = jnp.dot(w2_ref[...], h1, preferred_element_type=jnp.float32) + b2_ref[...]
    h2 = _leaky_relu(h2)                                       # (H, Bt)

    out = jnp.dot(w3_ref[...], h2, preferred_element_type=jnp.float32) + b3_ref[...]
    o_ref[...] = out.astype(o_ref.dtype)                       # (num_out, Bt)


@functools.partial(jax.jit, static_argnames=("batch_tile",))
def three_layer_mlp(x, params, batch_tile=65536):
    """Forward pass of ThreeLayerMLP_t.

    x: (B, num_inputs) float32
    params (PyTorch nn.Linear layout, biases as column vectors):
      w1 (H, num_in),  b1 (H, 1)
      w2 (H, H),       b2 (H, 1)
      w3 (num_out, H), b3 (num_out, 1)
    """
    w1, b1 = params["w1"], params["b1"]
    w2, b2 = params["w2"], params["b2"]
    w3, b3 = params["w3"], params["b3"]

    B, num_in = x.shape
    H = w1.shape[0]
    num_out = w3.shape[0]

    # Batch tile on the lane axis: multiple of 128, and never bigger than the
    # (128-rounded) batch itself so tiny batches stay a single block.
    batch_tile = max(128, pl.cdiv(batch_tile, 128) * 128)
    tile = min(batch_tile, pl.cdiv(B, 128) * 128)
    B_pad = pl.cdiv(B, tile) * tile

    # Batch on lanes: transpose x to (num_in, B) and pad the batch.
    x_t = x.T
    if B_pad != B:
        x_t = jnp.pad(x_t, ((0, 0), (0, B_pad - B)))

    grid = (B_pad // tile,)

    # Grid-invariant (weight / bias) blocks: full-extent, constant index_map,
    # so the pipeline fetches them once and never re-DMAs them.
    const = lambda shape: pl.BlockSpec(shape, lambda i: (0, 0))

    out_t = pl.pallas_call(
        _mlp_kernel,
        out_shape=jax.ShapeDtypeStruct((num_out, B_pad), x.dtype),
        grid=grid,
        in_specs=[
            pl.BlockSpec((num_in, tile), lambda i: (0, i)),
            const((H, num_in)),
            const((H, 1)),
            const((H, H)),
            const((H, 1)),
            const((num_out, H)),
            const((num_out, 1)),
        ],
        out_specs=pl.BlockSpec((num_out, tile), lambda i: (0, i)),
        compiler_params=pltpu.CompilerParams(
            dimension_semantics=("parallel",),
        ),
    )(x_t, w1, b1, w2, b2, w3, b3)

    # Padded batch columns computed bias-only garbage; drop them here.
    return out_t[:, :B].T


def init_params(key, num_inputs, num_outputs):
    """Deterministic synthetic init (uniform, PyTorch-Linear-like bounds)."""
    H = MLP_HIDDEN_LAYER_NEURONS
    keys = jax.random.split(key, 6)

    def uinit(k, shape, fan_in):
        bound = 1.0 / jnp.sqrt(fan_in)
        return jax.random.uniform(k, shape, jnp.float32, -bound, bound)

    return {
        "w1": uinit(keys[0], (H, num_inputs), num_inputs),
        "b1": uinit(keys[1], (H, 1), num_inputs),
        "w2": uinit(keys[2], (H, H), H),
        "b2": uinit(keys[3], (H, 1), H),
        "w3": uinit(keys[4], (num_outputs, H), H),
        "b3": uinit(keys[5], (num_outputs, 1), H),
    }


def reference_mlp(x, params):
    # Standard nn.Linear semantics: y = x @ W.T + b
    h = x @ params["w1"].T + params["b1"].T
    h = jnp.where(h > 0, h, LEAKY_SLOPE * h)
    h = h @ params["w2"].T + params["b2"].T
    h = jnp.where(h > 0, h, LEAKY_SLOPE * h)
    return h @ params["w3"].T + params["b3"].T


if __name__ == "__main__":
    num_inputs, num_outputs = 4, 3

    key = jax.random.PRNGKey(0)
    k_x, k_x2, k_x3, k_p = jax.random.split(key, 4)
    params = init_params(k_p, num_inputs, num_outputs)

    # Small batch (single padded tile).
    batch = 16
    x = jax.random.normal(k_x, (batch, num_inputs), jnp.float32)
    y = jax.block_until_ready(three_layer_mlp(x, params))
    y_ref = reference_mlp(x, params)
    assert y.shape == (batch, num_outputs)
    assert jnp.allclose(y, y_ref, atol=1e-5, rtol=1e-5), "mismatch vs reference (small)"

    # Medium batch: exercises non-multiple-of-128 padding in a single tile.
    batch2 = 1500
    x2 = jax.random.normal(k_x2, (batch2, num_inputs), jnp.float32)
    y2 = jax.block_until_ready(three_layer_mlp(x2, params))
    y2_ref = reference_mlp(x2, params)
    assert y2.shape == (batch2, num_outputs)
    assert jnp.allclose(y2, y2_ref, atol=1e-5, rtol=1e-5), "mismatch vs reference (padded)"

    # Multi-tile batch: exercises grid > 1 with a small forced tile.
    batch3 = 1000
    x3 = jax.random.normal(k_x3, (batch3, num_inputs), jnp.float32)
    y3 = jax.block_until_ready(three_layer_mlp(x3, params, batch_tile=256))
    y3_ref = reference_mlp(x3, params)
    assert y3.shape == (batch3, num_outputs)
    assert jnp.allclose(y3, y3_ref, atol=1e-5, rtol=1e-5), "mismatch vs reference (tiled)"

    print("KERNEL_OK")
</pallas_src>

<mosaic_0001>
module attributes {stable_mosaic.version = 11 : i64} {
  func.func @_mlp_kernel(%arg0: i32, %arg1: memref<4x128xf32, #tpu.memory_space<vmem>>, %arg2: memref<8x4xf32, #tpu.memory_space<vmem>>, %arg3: memref<8x1xf32, #tpu.memory_space<vmem>>, %arg4: memref<8x8xf32, #tpu.memory_space<vmem>>, %arg5: memref<8x1xf32, #tpu.memory_space<vmem>>, %arg6: memref<3x8xf32, #tpu.memory_space<vmem>>, %arg7: memref<3x1xf32, #tpu.memory_space<vmem>>, %arg8: memref<3x128xf32, #tpu.memory_space<vmem>>) attributes {dimension_semantics = [#tpu.dimension_semantics<parallel>], iteration_bounds = array<i64: 1>, scalar_prefetch = 0 : i64, scratch_operands = 0 : i64, tpu.core_type = #tpu.core_type<tc>, window_params = [{transform_indices = @transform_0, window_bounds = array<i64: 4, 128>}, {pipeline_mode = #tpu.pipeline_mode<synchronous>, transform_indices = @transform_1, window_bounds = array<i64: 8, 4>}, {pipeline_mode = #tpu.pipeline_mode<synchronous>, transform_indices = @transform_2, window_bounds = array<i64: 8, 1>}, {pipeline_mode = #tpu.pipeline_mode<synchronous>, transform_indices = @transform_3, window_bounds = array<i64: 8, 8>}, {pipeline_mode = #tpu.pipeline_mode<synchronous>, transform_indices = @transform_4, window_bounds = array<i64: 8, 1>}, {pipeline_mode = #tpu.pipeline_mode<synchronous>, transform_indices = @transform_5, window_bounds = array<i64: 3, 8>}, {pipeline_mode = #tpu.pipeline_mode<synchronous>, transform_indices = @transform_6, window_bounds = array<i64: 3, 1>}, {transform_indices = @transform_7, window_bounds = array<i64: 3, 128>}]} {
    %c0 = arith.constant 0 : index
    %c0_0 = arith.constant 0 : index
    %0 = vector.load %arg1[%c0, %c0_0] : memref<4x128xf32, #tpu.memory_space<vmem>>, vector<4x128xf32>
    %c0_1 = arith.constant 0 : index
    %c0_2 = arith.constant 0 : index
    %1 = vector.load %arg2[%c0_1, %c0_2] : memref<8x4xf32, #tpu.memory_space<vmem>>, vector<8x4xf32>
    %cst = arith.constant dense<0.000000e+00> : vector<8x128xf32>
    %2 = tpu.matmul %1, %0, %cst {dimension_numbers = #tpu.dot_dimension_numbers<[1], [0], [0], [1], [0, 0, 1, 1], [], []>} : vector<8x4xf32>, vector<4x128xf32>, vector<8x128xf32> -> vector<8x128xf32>
    %c0_3 = arith.constant 0 : index
    %c0_4 = arith.constant 0 : index
    %3 = vector.load %arg3[%c0_3, %c0_4] : memref<8x1xf32, #tpu.memory_space<vmem>>, vector<8x1xf32>
    %4 = vector.broadcast %3 : vector<8x1xf32> to vector<8x128xf32>
    %5 = arith.addf %2, %4 : vector<8x128xf32>
    %cst_5 = arith.constant 0.000000e+00 : f32
    %6 = vector.broadcast %cst_5 : f32 to vector<8x128xf32>
    %7 = arith.cmpf ogt, %5, %6 : vector<8x128xf32>
    %cst_6 = arith.constant 0.00999999977 : f32
    %8 = vector.broadcast %cst_6 : f32 to vector<8x128xf32>
    %9 = arith.mulf %8, %5 : vector<8x128xf32>
    %10 = arith.select %7, %5, %9 : vector<8x128xi1>, vector<8x128xf32>
    %c0_7 = arith.constant 0 : index
    %c0_8 = arith.constant 0 : index
    %11 = vector.load %arg4[%c0_7, %c0_8] : memref<8x8xf32, #tpu.memory_space<vmem>>, vector<8x8xf32>
    %cst_9 = arith.constant dense<0.000000e+00> : vector<8x128xf32>
    %12 = tpu.matmul %11, %10, %cst_9 {dimension_numbers = #tpu.dot_dimension_numbers<[1], [0], [0], [1], [0, 0, 1, 1], [], []>} : vector<8x8xf32>, vector<8x128xf32>, vector<8x128xf32> -> vector<8x128xf32>
    %c0_10 = arith.constant 0 : index
    %c0_11 = arith.constant 0 : index
    %13 = vector.load %arg5[%c0_10, %c0_11] : memref<8x1xf32, #tpu.memory_space<vmem>>, vector<8x1xf32>
    %14 = vector.broadcast %13 : vector<8x1xf32> to vector<8x128xf32>
    %15 = arith.addf %12, %14 : vector<8x128xf32>
    %cst_12 = arith.constant 0.000000e+00 : f32
    %16 = vector.broadcast %cst_12 : f32 to vector<8x128xf32>
    %17 = arith.cmpf ogt, %15, %16 : vector<8x128xf32>
    %cst_13 = arith.constant 0.00999999977 : f32
    %18 = vector.broadcast %cst_13 : f32 to vector<8x128xf32>
    %19 = arith.mulf %18, %15 : vector<8x128xf32>
    %20 = arith.select %17, %15, %19 : vector<8x128xi1>, vector<8x128xf32>
    %c0_14 = arith.constant 0 : index
    %c0_15 = arith.constant 0 : index
    %21 = vector.load %arg6[%c0_14, %c0_15] : memref<3x8xf32, #tpu.memory_space<vmem>>, vector<3x8xf32>
    %cst_16 = arith.constant dense<0.000000e+00> : vector<3x128xf32>
    %22 = tpu.matmul %21, %20, %cst_16 {dimension_numbers = #tpu.dot_dimension_numbers<[1], [0], [0], [1], [0, 0, 1, 1], [], []>} : vector<3x8xf32>, vector<8x128xf32>, vector<3x128xf32> -> vector<3x128xf32>
    %c0_17 = arith.constant 0 : index
    %c0_18 = arith.constant 0 : index
    %23 = vector.load %arg7[%c0_17, %c0_18] : memref<3x1xf32, #tpu.memory_space<vmem>>, vector<3x1xf32>
    %24 = vector.broadcast %23 : vector<3x1xf32> to vector<3x128xf32>
    %25 = arith.addf %22, %24 : vector<3x128xf32>
    %c0_19 = arith.constant 0 : index
    %c0_20 = arith.constant 0 : index
    %26 = vector.load %arg8[%c0_19, %c0_20] : memref<3x128xf32, #tpu.memory_space<vmem>>, vector<3x128xf32>
    tpu.vector_store %arg8[%c0_19, %c0_20], %25 {strides = array<i32>} : memref<3x128xf32, #tpu.memory_space<vmem>>, vector<3x128xf32>,
    return
  }
  func.func @transform_0(%arg0: i32) -> (i32, i32) {
    %c0_i32 = arith.constant 0 : i32
    %c0_i32_0 = arith.constant 0 : i32
    return %c0_i32, %arg0 : i32, i32
  }
  func.func @transform_1(%arg0: i32) -> (i32, i32) {
    %c0_i32 = arith.constant 0 : i32
    %c0_i32_0 = arith.constant 0 : i32
    %c0_i32_1 = arith.constant 0 : i32
    return %c0_i32, %c0_i32_0 : i32, i32
  }
  func.func @transform_2(%arg0: i32) -> (i32, i32) {
    %c0_i32 = arith.constant 0 : i32
    %c0_i32_0 = arith.constant 0 : i32
    %c0_i32_1 = arith.constant 0 : i32
    return %c0_i32, %c0_i32_0 : i32, i32
  }
  func.func @transform_3(%arg0: i32) -> (i32, i32) {
    %c0_i32 = arith.constant 0 : i32
    %c0_i32_0 = arith.constant 0 : i32
    %c0_i32_1 = arith.constant 0 : i32
    return %c0_i32, %c0_i32_0 : i32, i32
  }
  func.func @transform_4(%arg0: i32) -> (i32, i32) {
    %c0_i32 = arith.constant 0 : i32
    %c0_i32_0 = arith.constant 0 : i32
    %c0_i32_1 = arith.constant 0 : i32
    return %c0_i32, %c0_i32_0 : i32, i32
  }
  func.func @transform_5(%arg0: i32) -> (i32, i32) {
    %c0_i32 = arith.constant 0 : i32
    %c0_i32_0 = arith.constant 0 : i32
    %c0_i32_1 = arith.constant 0 : i32
    return %c0_i32, %c0_i32_0 : i32, i32
  }
  func.func @transform_6(%arg0: i32) -> (i32, i32) {
    %c0_i32 = arith.constant 0 : i32
    %c0_i32_0 = arith.constant 0 : i32
    %c0_i32_1 = arith.constant 0 : i32
    return %c0_i32, %c0_i32_0 : i32, i32
  }
  func.func @transform_7(%arg0: i32) -> (i32, i32) {
    %c0_i32 = arith.constant 0 : i32
    %c0_i32_0 = arith.constant 0 : i32
    return %c0_i32, %arg0 : i32, i32
  }
}

</mosaic_0001>

<bundles_post_ra>
// kernel: three_layer_mlp.1
= control target key start
LH: loop header
LB: loop body
LE: loop exit
PB: predicated region body
PF: predicated region fallthrough
CT: control target
= control target key end

     0   :  { %vm38_vm0 = vcmask 1043456   ;;  %vm34_vm1 = vcmask 31744   ;;  %v314_v0 = vmov 0.0   ;;  %vm315_vm2 = vmmov 0   ;;  %s383_s0 = inlined_call_operand.vmem [shape: f32[4,128], index: 0, kind: input, shape index: {}]   ;;  %s384_s1 = inlined_call_operand.vmem [shape: f32[8,4], index: 1, kind: input, shape index: {}]   ;;  %s385_s2 = inlined_call_operand.vmem [shape: f32[8,1], index: 2, kind: input, shape index: {}]   ;;  %s386_s4 = inlined_call_operand.vmem [shape: f32[8,1], index: 4, kind: input, shape index: {}]   ;;  %s387_s3 = inlined_call_operand.vmem [shape: f32[8,8], index: 3, kind: input, shape index: {}]   ;;  %s388_s6 = inlined_call_operand.vmem [shape: f32[3,1], index: 6, kind: input, shape index: {}]   ;;  %s389_s5 = inlined_call_operand.vmem [shape: f32[3,8], index: 5, kind: input, shape index: {}]   ;;  %s390_s7 = inlined_call_operand.vmem [shape: f32[3,128], index: 7, kind: output, shape index: {}]  }
   0x1   :  { %294 = vmatprep.subr.mxu0 %v314_v0  ;;  %v26_v1 = vld [vmem:[%s383_s0] sm:$0xf]  ;;  %296 = vmatprep.mubr.msk.f32.mxu0 %vm315_vm2, %v314_v0  ;;  %v316_v4 = vmov 0   ;;  %vm122_vm4 = vcmask 64512  }
   0x2   :  { %v27_v2 = vld [vmem:[%s384_s1] sm:$0xff]  ;;  %295 = vmatpush3.msk.msra.mxu0 %vm38_vm0, %v26_v1  ;;  %312 = vset.pattern.permute.xlu0 %v316_v4 }
   0x3   :  { %v28_v3 = vld [vmem:[%s385_s2] sm:$0xff]  ;;  %297 = vmatmul.mubr.msk.f32.vlgmr.msra.gmra.mxu0 %vm34_vm1, %v27_v2  ;;  %299 = vmatprep.subr.mxu1 %v314_v0 }
   0x4   :  { %31 = vperm.xlu0 %312, %v28_v3   ;;  %v116_v5 = vld [vmem:[%s386_s4] sm:$0xff]  ;;  %301 = vmatprep.mubr.msk.f32.mxu1 %vm315_vm2, %v314_v0 }
   0x5   :  { %304 = vmatprep.subr.mxu0 %v314_v0  ;;  %306 = vmatprep.mubr.msk.f32.mxu0 %vm315_vm2, %v314_v0  ;;  %v115_v11 = vld [vmem:[%s387_s3] sm:$0xff] }
   0x6   :  { %313 = vset.pattern.permute.xlu1 %v316_v4  ;;  %v200_v13 = vld [vmem:[%s388_s6] sm:$0x7] }
   0x7   :  { %203 = vperm.xlu1 %313, %v200_v13   ;;  %v199_v19 = vld [vmem:[%s389_s5] sm:$0x7] }
   0x8   :  { %119 = vperm.xlu0 %312, %v116_v5  }
  0x7f   :  { %v32_v6 = vpop.permute.xlu0 %31 }
  0x82   :  { %v204_v21 = vpop.permute.xlu1 %203 }
  0x83   :  { %v120_v14 = vpop.permute.xlu0 %119 }
  0xc3   :  { %v108_v7 = vpop.f32.mrf.mxu0 }
  0xc4   :  { %v109_v8 = vadd.f32 %v108_v7, %v32_v6 }
  0xc5   :  { %v298_v9 = vpop.f32.mrf.mxu0 }
  0xc6   :  { %vm112_vm3 = vcmp.gt.f32.partialorder %v109_v8, 0.0  ;;  %v113_v10 = vmul.f32 0.01, %v109_v8 }
  0xc8   :  { %v114_v12 = vsel %vm112_vm3, %v109_v8, %v113_v10 }
  0xc9   :  { %300 = vmatpush3.msra.mxu1 %v114_v12 }
  0xca   :  { %302 = vmatmul.mubr.msk.f32.vlgmr.msra.gmra.mxu1 %vm122_vm4, %v115_v11 }
 0x18a   :  { %v192_v15 = vpop.f32.mrf.mxu1 }
 0x18b   :  { %v193_v16 = vadd.f32 %v192_v15, %v120_v14 }
 0x18c   :  { %v303_v17 = vpop.f32.mrf.mxu1 }
 0x18d   :  { %vm196_vm5 = vcmp.gt.f32.partialorder %v193_v16, 0.0  ;;  %v197_v18 = vmul.f32 0.01, %v193_v16 }
 0x18f   :  { %v198_v20 = vsel %vm196_vm5, %v193_v16, %v197_v18 }
 0x190   :  { %305 = vmatpush3.msra.mxu0 %v198_v20 }
 0x191   :  { %307 = vmatmul.mubr.msk.f32.vlgmr.msra.gmra.mxu0 %vm122_vm4, %v199_v19 }
 0x251   :  { %v275_v22 = vpop.f32.mrf.mxu0 }
 0x252   :  { %v276_v23 = vadd.f32 %v275_v22, %v204_v21 }
 0x253   :  { %v308_v24 = vpop.f32.mrf.mxu0 }
 0x254   :  { %279 = vst [vmem:[%s390_s7] sm:$0x7] %v276_v23 }

</bundles_post_ra>
